<compile_context>
chip_gen: v6e
topology: v6e:2x2x1
jax: 0.10.0
libtpu: 0.0.40
codegen_flags: <defaults>
</compile_context>

<pallas_src>
import jax
import jax.numpy as jnp
import numpy as np
from jax.experimental import pallas as pl
from jax.experimental.pallas import tpu as pltpu

B, N = 2, 16                 # batch, num_nodes
IN_CH, HID, OUT = 4, 32, 32
EPS = 1e-5

BN_ROWS = B * N              # 32 flattened rows (BatchNorm spans all of them)
CP = 8                       # in_channels padded to a sublane multiple (4 -> 8)

# Static row offsets inside the single packed parameter slab (all mult. of 8).
_O_W1 = 0                    # (CP,  HID) conv1 weight (zero-padded rows 4..7)
_O_W2 = _O_W1 + CP           # (HID, HID) conv2 weight
_O_W3 = _O_W2 + HID          # (HID, OUT) conv3 weight
_O_WL1 = _O_W3 + HID         # lin weight rows acting on x1
_O_WL2 = _O_WL1 + HID        # lin weight rows acting on x2
_O_WL3 = _O_WL2 + HID        # lin weight rows acting on x3
_O_VEC = _O_WL3 + OUT        # 168: start of per-channel vectors
# vector rows (relative to _O_VEC): b1,g1,be1, b2,g2,be2, b3,g3,be3, bl
_N_VEC = 10
_SLAB_ROWS = 184             # 168 + 10, padded up to a sublane multiple


def _gnn_kernel(x_ref, adj_ref, p_ref, out_ref):
    # Pad input channels 4 -> 8 in-kernel (keeps the wrapper free of pad HLOs
    # and keeps the MXU contraction on a full sublane tile).
    x = jnp.concatenate(
        [x_ref[...], jnp.zeros((BN_ROWS, CP - IN_CH), jnp.float32)], axis=-1)

    # Row-normalize the stacked adjacency once: 1 / clamp(deg, 1).
    adj = adj_ref[...]                          # (B*N, N): per-graph blocks stacked
    deg = jnp.sum(adj, axis=-1, keepdims=True)
    adj_n = adj * (1.0 / jnp.maximum(deg, 1.0))

    def vec(k):                                 # (1, C) broadcast row from the slab
        r = _O_VEC + k
        return p_ref[r:r + 1, :]

    def w(lo, hi):                              # (hi-lo, C) weight block
        return p_ref[lo:hi, :]

    def sage(h, w_lo, w_hi, b_k):
        # Block-diagonal mean aggregation as B static-sliced (N,N)@(N,C) dots,
        # then one 2-D MXU projection.
        aggs = [jnp.dot(adj_n[b * N:(b + 1) * N, :],
                        h[b * N:(b + 1) * N, :],
                        preferred_element_type=jnp.float32)
                for b in range(B)]
        agg = jnp.concatenate(aggs, axis=0)     # (B*N, C) sublane concat
        return jnp.dot(agg, w(w_lo, w_hi),
                       preferred_element_type=jnp.float32) + vec(b_k)

    def bn(h, g_k, be_k):
        # BatchNorm1d (training mode): stats over all B*N rows, biased variance.
        # Single pass: one cross-sublane reduction over [h | h*h].
        c = h.shape[-1]
        stats = jnp.sum(jnp.concatenate([h, h * h], axis=-1),
                        axis=0, keepdims=True) * (1.0 / BN_ROWS)
        mean = stats[:, :c]
        var = stats[:, c:] - mean * mean
        return (h - mean) * jax.lax.rsqrt(var + EPS) * vec(g_k) + vec(be_k)

    x1 = bn(jnp.maximum(sage(x,  _O_W1, _O_W2,  0), 0.0), 1, 2)
    x2 = bn(jnp.maximum(sage(x1, _O_W2, _O_W3,  3), 0.0), 4, 5)
    x3 = bn(jnp.maximum(sage(x2, _O_W3, _O_WL1, 6), 0.0), 7, 8)

    # Final linear on concat([x1, x2, x3], -1): split matmul (identical math,
    # avoids an in-kernel lane concat of the activations).
    lin = (jnp.dot(x1, w(_O_WL1, _O_WL2), preferred_element_type=jnp.float32)
           + jnp.dot(x2, w(_O_WL2, _O_WL3), preferred_element_type=jnp.float32)
           + jnp.dot(x3, w(_O_WL3, _O_VEC), preferred_element_type=jnp.float32)
           + vec(9))
    out_ref[...] = jnp.maximum(lin, 0.0)


def pack_params(p):
    """One-time packing of the 14 small parameter arrays into one (184,32) slab.

    Called once at setup (NOT inside the per-call jitted forward), so the
    concat/pad HLOs never appear on the per-call path.
    """
    w1p = jnp.zeros((CP, HID), jnp.float32).at[:IN_CH, :].set(p['w1'])
    vrows = [p['b1'], p['g1'], p['be1'],
             p['b2'], p['g2'], p['be2'],
             p['b3'], p['g3'], p['be3'],
             p['bl']]
    vmat = jnp.concatenate([r.reshape(1, -1).astype(jnp.float32) for r in vrows],
                           axis=0)                                   # (10, 32)
    pad = jnp.zeros((_SLAB_ROWS - _O_VEC - _N_VEC, HID), jnp.float32)
    slab = jnp.concatenate(
        [w1p, p['w2'], p['w3'], p['wl'], vmat, pad], axis=0)         # (184, 32)
    return slab


@jax.jit
def gnn_forward(x, adj, slab):
    # Only free reshapes on the per-call path; adjacency is passed as the
    # stacked per-graph blocks, the packed parameter slab is precomputed.
    xf = x.reshape(BN_ROWS, IN_CH)
    adj_s = adj.reshape(BN_ROWS, N)

    vmem = pl.BlockSpec(memory_space=pltpu.MemorySpace.VMEM)
    out = pl.pallas_call(
        _gnn_kernel,
        out_shape=jax.ShapeDtypeStruct((BN_ROWS, OUT), jnp.float32),
        in_specs=[vmem, vmem, vmem],
        out_specs=vmem,
    )(xf, adj_s, slab)
    return out.reshape(B, N, OUT)


def gnn_reference(x, adj, p):
    """Pure-JAX reference with identical semantics (batched form)."""
    deg = jnp.maximum(adj.sum(-1, keepdims=True), 1.0)

    def sage(h, w, b):
        return jnp.matmul(adj, h) / deg @ w + b

    def bn(h, g, be):
        flat = h.reshape(-1, h.shape[-1])
        m = flat.mean(0)
        v = ((flat - m) ** 2).mean(0)
        return (h - m) / jnp.sqrt(v + EPS) * g.reshape(-1) + be.reshape(-1)

    x1 = bn(jax.nn.relu(sage(x,  p['w1'], p['b1'])), p['g1'], p['be1'])
    x2 = bn(jax.nn.relu(sage(x1, p['w2'], p['b2'])), p['g2'], p['be2'])
    x3 = bn(jax.nn.relu(sage(x2, p['w3'], p['b3'])), p['g3'], p['be3'])
    xc = jnp.concatenate([x1, x2, x3], axis=-1)
    return jax.nn.relu(xc @ p['wl'] + p['bl'].reshape(-1))


def make_params(key):
    ks = jax.random.split(key, 8)

    def w_init(k, shape):
        fan_in = shape[0]
        return jax.random.uniform(k, shape, jnp.float32,
                                  -1.0 / np.sqrt(fan_in), 1.0 / np.sqrt(fan_in))

    return {
        'w1': w_init(ks[0], (IN_CH, HID)),
        'b1': w_init(ks[1], (1, 1, HID)) * 0.1,
        'g1': jnp.ones((1, 1, HID), jnp.float32),
        'be1': jnp.zeros((1, 1, HID), jnp.float32),
        'w2': w_init(ks[2], (HID, HID)),
        'b2': w_init(ks[3], (1, 1, HID)) * 0.1,
        'g2': jnp.ones((1, 1, HID), jnp.float32),
        'be2': jnp.zeros((1, 1, HID), jnp.float32),
        'w3': w_init(ks[4], (HID, OUT)),
        'b3': w_init(ks[5], (1, 1, OUT)) * 0.1,
        'g3': jnp.ones((1, 1, OUT), jnp.float32),
        'be3': jnp.zeros((1, 1, OUT), jnp.float32),
        'wl': w_init(ks[6], (2 * HID + OUT, OUT)),
        'bl': w_init(ks[7], (1, 1, OUT)) * 0.1,
    }


if __name__ == "__main__":
    key = jax.random.PRNGKey(0)
    kx, kadj, kp = jax.random.split(key, 3)

    x = jax.random.normal(kx, (B, N, IN_CH), jnp.float32)
    # symmetric 0/1 adjacency
    a = (jax.random.uniform(kadj, (B, N, N)) > 0.6).astype(jnp.float32)
    adj = jnp.maximum(a, jnp.swapaxes(a, -1, -2))

    params = make_params(kp)
    slab = jax.block_until_ready(pack_params(params))   # one-time setup

    out = gnn_forward(x, adj, slab)
    out = jax.block_until_ready(out)

    ref = gnn_reference(x, adj, params)
    np.testing.assert_allclose(np.asarray(out), np.asarray(ref),
                               rtol=1e-4, atol=1e-4)
    print("KERNEL_OK")
</pallas_src>

<mosaic_0001>
module attributes {stable_mosaic.version = 11 : i64} {
  func.func @_gnn_kernel(%arg0: memref<32x4xf32, #tpu.memory_space<vmem>>, %arg1: memref<32x16xf32, #tpu.memory_space<vmem>>, %arg2: memref<184x32xf32, #tpu.memory_space<vmem>>, %arg3: memref<32x32xf32, #tpu.memory_space<vmem>>) attributes {dimension_semantics = [], scalar_prefetch = 0 : i64, scratch_operands = 0 : i64, tpu.core_type = #tpu.core_type<tc>} {
    %c0 = arith.constant 0 : index
    %c0_0 = arith.constant 0 : index
    %0 = vector.load %arg0[%c0, %c0_0] : memref<32x4xf32, #tpu.memory_space<vmem>>, vector<32x4xf32>
    %cst = arith.constant 0.000000e+00 : f32
    %1 = vector.broadcast %cst : f32 to vector<32x4xf32>
    %2 = tpu.concatenate %0, %1 in 1 : vector<32x4xf32>, vector<32x4xf32> -> vector<32x8xf32>
    %c0_1 = arith.constant 0 : index
    %c0_2 = arith.constant 0 : index
    %3 = vector.load %arg1[%c0_1, %c0_2] : memref<32x16xf32, #tpu.memory_space<vmem>>, vector<32x16xf32>
    %cst_3 = arith.constant dense<0.000000e+00> : vector<32xf32>
    %4 = vector.multi_reduction <add>, %3, %cst_3 [1] : vector<32x16xf32> to vector<32xf32>
    %5 = vector.shape_cast %4 : vector<32xf32> to vector<32x1xf32>
    %cst_4 = arith.constant 1.000000e+00 : f32
    %6 = vector.broadcast %cst_4 : f32 to vector<32x1xf32>
    %7 = arith.maximumf %5, %6 : vector<32x1xf32>
    %cst_5 = arith.constant 1.000000e+00 : f32
    %8 = vector.broadcast %cst_5 : f32 to vector<32x1xf32>
    %9 = arith.divf %8, %7 : vector<32x1xf32>
    %10 = vector.broadcast %9 : vector<32x1xf32> to vector<32x16xf32>
    %11 = arith.mulf %3, %10 : vector<32x16xf32>
    %12 = vector.extract_strided_slice %11 {offsets = [0, 0], sizes = [16, 16], strides = [1, 1]} : vector<32x16xf32> to vector<16x16xf32>
    %13 = vector.extract_strided_slice %2 {offsets = [0, 0], sizes = [16, 8], strides = [1, 1]} : vector<32x8xf32> to vector<16x8xf32>
    %cst_6 = arith.constant dense<0.000000e+00> : vector<16x8xf32>
    %14 = tpu.matmul %12, %13, %cst_6 {dimension_numbers = #tpu.dot_dimension_numbers<[1], [0], [0], [1], [0, 0, 1, 1], [], []>} : vector<16x16xf32>, vector<16x8xf32>, vector<16x8xf32> -> vector<16x8xf32>
    %15 = vector.extract_strided_slice %11 {offsets = [16, 0], sizes = [16, 16], strides = [1, 1]} : vector<32x16xf32> to vector<16x16xf32>
    %16 = vector.extract_strided_slice %2 {offsets = [16, 0], sizes = [16, 8], strides = [1, 1]} : vector<32x8xf32> to vector<16x8xf32>
    %cst_7 = arith.constant dense<0.000000e+00> : vector<16x8xf32>
    %17 = tpu.matmul %15, %16, %cst_7 {dimension_numbers = #tpu.dot_dimension_numbers<[1], [0], [0], [1], [0, 0, 1, 1], [], []>} : vector<16x16xf32>, vector<16x8xf32>, vector<16x8xf32> -> vector<16x8xf32>
    %18 = tpu.concatenate %14, %17 in 0 : vector<16x8xf32>, vector<16x8xf32> -> vector<32x8xf32>
    %c0_8 = arith.constant 0 : index
    %c0_9 = arith.constant 0 : index
    %19 = vector.load %arg2[%c0_8, %c0_9] : memref<184x32xf32, #tpu.memory_space<vmem>>, vector<8x32xf32>
    %cst_10 = arith.constant dense<0.000000e+00> : vector<32x32xf32>
    %20 = tpu.matmul %18, %19, %cst_10 {dimension_numbers = #tpu.dot_dimension_numbers<[1], [0], [0], [1], [0, 0, 1, 1], [], []>} : vector<32x8xf32>, vector<8x32xf32>, vector<32x32xf32> -> vector<32x32xf32>
    %c168 = arith.constant 168 : index
    %c0_11 = arith.constant 0 : index
    %21 = vector.load %arg2[%c168, %c0_11] : memref<184x32xf32, #tpu.memory_space<vmem>>, vector<1x32xf32>
    %22 = vector.broadcast %21 : vector<1x32xf32> to vector<32x32xf32>
    %23 = arith.addf %20, %22 : vector<32x32xf32>
    %cst_12 = arith.constant 0.000000e+00 : f32
    %24 = vector.broadcast %cst_12 : f32 to vector<32x32xf32>
    %25 = arith.maximumf %23, %24 : vector<32x32xf32>
    %26 = arith.mulf %25, %25 : vector<32x32xf32>
    %27 = tpu.concatenate %25, %26 in 1 : vector<32x32xf32>, vector<32x32xf32> -> vector<32x64xf32>
    %cst_13 = arith.constant dense<0.000000e+00> : vector<64xf32>
    %28 = vector.multi_reduction <add>, %27, %cst_13 [0] : vector<32x64xf32> to vector<64xf32>
    %29 = vector.shape_cast %28 : vector<64xf32> to vector<1x64xf32>
    %cst_14 = arith.constant 3.125000e-02 : f32
    %30 = vector.broadcast %cst_14 : f32 to vector<1x64xf32>
    %31 = arith.mulf %29, %30 : vector<1x64xf32>
    %32 = vector.extract_strided_slice %31 {offsets = [0, 0], sizes = [1, 32], strides = [1, 1]} : vector<1x64xf32> to vector<1x32xf32>
    %33 = vector.extract_strided_slice %31 {offsets = [0, 32], sizes = [1, 32], strides = [1, 1]} : vector<1x64xf32> to vector<1x32xf32>
    %34 = arith.mulf %32, %32 : vector<1x32xf32>
    %35 = arith.subf %33, %34 : vector<1x32xf32>
    %36 = vector.broadcast %32 : vector<1x32xf32> to vector<32x32xf32>
    %37 = arith.subf %25, %36 : vector<32x32xf32>
    %cst_15 = arith.constant 9.99999974E-6 : f32
    %38 = vector.broadcast %cst_15 : f32 to vector<1x32xf32>
    %39 = arith.addf %35, %38 : vector<1x32xf32>
    %40 = math.rsqrt %39 : vector<1x32xf32>
    %41 = vector.broadcast %40 : vector<1x32xf32> to vector<32x32xf32>
    %42 = arith.mulf %37, %41 : vector<32x32xf32>
    %c169 = arith.constant 169 : index
    %c0_16 = arith.constant 0 : index
    %43 = vector.load %arg2[%c169, %c0_16] : memref<184x32xf32, #tpu.memory_space<vmem>>, vector<1x32xf32>
    %44 = vector.broadcast %43 : vector<1x32xf32> to vector<32x32xf32>
    %45 = arith.mulf %42, %44 : vector<32x32xf32>
    %c170 = arith.constant 170 : index
    %c0_17 = arith.constant 0 : index
    %46 = vector.load %arg2[%c170, %c0_17] : memref<184x32xf32, #tpu.memory_space<vmem>>, vector<1x32xf32>
    %47 = vector.broadcast %46 : vector<1x32xf32> to vector<32x32xf32>
    %48 = arith.addf %45, %47 : vector<32x32xf32>
    %49 = vector.extract_strided_slice %11 {offsets = [0, 0], sizes = [16, 16], strides = [1, 1]} : vector<32x16xf32> to vector<16x16xf32>
    %50 = vector.extract_strided_slice %48 {offsets = [0, 0], sizes = [16, 32], strides = [1, 1]} : vector<32x32xf32> to vector<16x32xf32>
    %cst_18 = arith.constant dense<0.000000e+00> : vector<16x32xf32>
    %51 = tpu.matmul %49, %50, %cst_18 {dimension_numbers = #tpu.dot_dimension_numbers<[1], [0], [0], [1], [0, 0, 1, 1], [], []>} : vector<16x16xf32>, vector<16x32xf32>, vector<16x32xf32> -> vector<16x32xf32>
    %52 = vector.extract_strided_slice %11 {offsets = [16, 0], sizes = [16, 16], strides = [1, 1]} : vector<32x16xf32> to vector<16x16xf32>
    %53 = vector.extract_strided_slice %48 {offsets = [16, 0], sizes = [16, 32], strides = [1, 1]} : vector<32x32xf32> to vector<16x32xf32>
    %cst_19 = arith.constant dense<0.000000e+00> : vector<16x32xf32>
    %54 = tpu.matmul %52, %53, %cst_19 {dimension_numbers = #tpu.dot_dimension_numbers<[1], [0], [0], [1], [0, 0, 1, 1], [], []>} : vector<16x16xf32>, vector<16x32xf32>, vector<16x32xf32> -> vector<16x32xf32>
    %55 = tpu.concatenate %51, %54 in 0 : vector<16x32xf32>, vector<16x32xf32> -> vector<32x32xf32>
    %c8 = arith.constant 8 : index
    %c0_20 = arith.constant 0 : index
    %56 = vector.load %arg2[%c8, %c0_20] : memref<184x32xf32, #tpu.memory_space<vmem>>, vector<32x32xf32>
    %cst_21 = arith.constant dense<0.000000e+00> : vector<32x32xf32>
    %57 = tpu.matmul %55, %56, %cst_21 {dimension_numbers = #tpu.dot_dimension_numbers<[1], [0], [0], [1], [0, 0, 1, 1], [], []>} : vector<32x32xf32>, vector<32x32xf32>, vector<32x32xf32> -> vector<32x32xf32>
    %c171 = arith.constant 171 : index
    %c0_22 = arith.constant 0 : index
    %58 = vector.load %arg2[%c171, %c0_22] : memref<184x32xf32, #tpu.memory_space<vmem>>, vector<1x32xf32>
    %59 = vector.broadcast %58 : vector<1x32xf32> to vector<32x32xf32>
    %60 = arith.addf %57, %59 : vector<32x32xf32>
    %cst_23 = arith.constant 0.000000e+00 : f32
    %61 = vector.broadcast %cst_23 : f32 to vector<32x32xf32>
    %62 = arith.maximumf %60, %61 : vector<32x32xf32>
    %63 = arith.mulf %62, %62 : vector<32x32xf32>
    %64 = tpu.concatenate %62, %63 in 1 : vector<32x32xf32>, vector<32x32xf32> -> vector<32x64xf32>
    %cst_24 = arith.constant dense<0.000000e+00> : vector<64xf32>
    %65 = vector.multi_reduction <add>, %64, %cst_24 [0] : vector<32x64xf32> to vector<64xf32>
    %66 = vector.shape_cast %65 : vector<64xf32> to vector<1x64xf32>
    %cst_25 = arith.constant 3.125000e-02 : f32
    %67 = vector.broadcast %cst_25 : f32 to vector<1x64xf32>
    %68 = arith.mulf %66, %67 : vector<1x64xf32>
    %69 = vector.extract_strided_slice %68 {offsets = [0, 0], sizes = [1, 32], strides = [1, 1]} : vector<1x64xf32> to vector<1x32xf32>
    %70 = vector.extract_strided_slice %68 {offsets = [0, 32], sizes = [1, 32], strides = [1, 1]} : vector<1x64xf32> to vector<1x32xf32>
    %71 = arith.mulf %69, %69 : vector<1x32xf32>
    %72 = arith.subf %70, %71 : vector<1x32xf32>
    %73 = vector.broadcast %69 : vector<1x32xf32> to vector<32x32xf32>
    %74 = arith.subf %62, %73 : vector<32x32xf32>
    %cst_26 = arith.constant 9.99999974E-6 : f32
    %75 = vector.broadcast %cst_26 : f32 to vector<1x32xf32>
    %76 = arith.addf %72, %75 : vector<1x32xf32>
    %77 = math.rsqrt %76 : vector<1x32xf32>
    %78 = vector.broadcast %77 : vector<1x32xf32> to vector<32x32xf32>
    %79 = arith.mulf %74, %78 : vector<32x32xf32>
    %c172 = arith.constant 172 : index
    %c0_27 = arith.constant 0 : index
    %80 = vector.load %arg2[%c172, %c0_27] : memref<184x32xf32, #tpu.memory_space<vmem>>, vector<1x32xf32>
    %81 = vector.broadcast %80 : vector<1x32xf32> to vector<32x32xf32>
    %82 = arith.mulf %79, %81 : vector<32x32xf32>
    %c173 = arith.constant 173 : index
    %c0_28 = arith.constant 0 : index
    %83 = vector.load %arg2[%c173, %c0_28] : memref<184x32xf32, #tpu.memory_space<vmem>>, vector<1x32xf32>
    %84 = vector.broadcast %83 : vector<1x32xf32> to vector<32x32xf32>
    %85 = arith.addf %82, %84 : vector<32x32xf32>
    %86 = vector.extract_strided_slice %11 {offsets = [0, 0], sizes = [16, 16], strides = [1, 1]} : vector<32x16xf32> to vector<16x16xf32>
    %87 = vector.extract_strided_slice %85 {offsets = [0, 0], sizes = [16, 32], strides = [1, 1]} : vector<32x32xf32> to vector<16x32xf32>
    %cst_29 = arith.constant dense<0.000000e+00> : vector<16x32xf32>
    %88 = tpu.matmul %86, %87, %cst_29 {dimension_numbers = #tpu.dot_dimension_numbers<[1], [0], [0], [1], [0, 0, 1, 1], [], []>} : vector<16x16xf32>, vector<16x32xf32>, vector<16x32xf32> -> vector<16x32xf32>
    %89 = vector.extract_strided_slice %11 {offsets = [16, 0], sizes = [16, 16], strides = [1, 1]} : vector<32x16xf32> to vector<16x16xf32>
    %90 = vector.extract_strided_slice %85 {offsets = [16, 0], sizes = [16, 32], strides = [1, 1]} : vector<32x32xf32> to vector<16x32xf32>
    %cst_30 = arith.constant dense<0.000000e+00> : vector<16x32xf32>
    %91 = tpu.matmul %89, %90, %cst_30 {dimension_numbers = #tpu.dot_dimension_numbers<[1], [0], [0], [1], [0, 0, 1, 1], [], []>} : vector<16x16xf32>, vector<16x32xf32>, vector<16x32xf32> -> vector<16x32xf32>
    %92 = tpu.concatenate %88, %91 in 0 : vector<16x32xf32>, vector<16x32xf32> -> vector<32x32xf32>
    %c40 = arith.constant 40 : index
    %c0_31 = arith.constant 0 : index
    %93 = vector.load %arg2[%c40, %c0_31] : memref<184x32xf32, #tpu.memory_space<vmem>>, vector<32x32xf32>
    %cst_32 = arith.constant dense<0.000000e+00> : vector<32x32xf32>
    %94 = tpu.matmul %92, %93, %cst_32 {dimension_numbers = #tpu.dot_dimension_numbers<[1], [0], [0], [1], [0, 0, 1, 1], [], []>} : vector<32x32xf32>, vector<32x32xf32>, vector<32x32xf32> -> vector<32x32xf32>
    %c174 = arith.constant 174 : index
    %c0_33 = arith.constant 0 : index
    %95 = vector.load %arg2[%c174, %c0_33] : memref<184x32xf32, #tpu.memory_space<vmem>>, vector<1x32xf32>
    %96 = vector.broadcast %95 : vector<1x32xf32> to vector<32x32xf32>
    %97 = arith.addf %94, %96 : vector<32x32xf32>
    %cst_34 = arith.constant 0.000000e+00 : f32
    %98 = vector.broadcast %cst_34 : f32 to vector<32x32xf32>
    %99 = arith.maximumf %97, %98 : vector<32x32xf32>
    %100 = arith.mulf %99, %99 : vector<32x32xf32>
    %101 = tpu.concatenate %99, %100 in 1 : vector<32x32xf32>, vector<32x32xf32> -> vector<32x64xf32>
    %cst_35 = arith.constant dense<0.000000e+00> : vector<64xf32>
    %102 = vector.multi_reduction <add>, %101, %cst_35 [0] : vector<32x64xf32> to vector<64xf32>
    %103 = vector.shape_cast %102 : vector<64xf32> to vector<1x64xf32>
    %cst_36 = arith.constant 3.125000e-02 : f32
    %104 = vector.broadcast %cst_36 : f32 to vector<1x64xf32>
    %105 = arith.mulf %103, %104 : vector<1x64xf32>
    %106 = vector.extract_strided_slice %105 {offsets = [0, 0], sizes = [1, 32], strides = [1, 1]} : vector<1x64xf32> to vector<1x32xf32>
    %107 = vector.extract_strided_slice %105 {offsets = [0, 32], sizes = [1, 32], strides = [1, 1]} : vector<1x64xf32> to vector<1x32xf32>
    %108 = arith.mulf %106, %106 : vector<1x32xf32>
    %109 = arith.subf %107, %108 : vector<1x32xf32>
    %110 = vector.broadcast %106 : vector<1x32xf32> to vector<32x32xf32>
    %111 = arith.subf %99, %110 : vector<32x32xf32>
    %cst_37 = arith.constant 9.99999974E-6 : f32
    %112 = vector.broadcast %cst_37 : f32 to vector<1x32xf32>
    %113 = arith.addf %109, %112 : vector<1x32xf32>
    %114 = math.rsqrt %113 : vector<1x32xf32>
    %115 = vector.broadcast %114 : vector<1x32xf32> to vector<32x32xf32>
    %116 = arith.mulf %111, %115 : vector<32x32xf32>
    %c175 = arith.constant 175 : index
    %c0_38 = arith.constant 0 : index
    %117 = vector.load %arg2[%c175, %c0_38] : memref<184x32xf32, #tpu.memory_space<vmem>>, vector<1x32xf32>
    %118 = vector.broadcast %117 : vector<1x32xf32> to vector<32x32xf32>
    %119 = arith.mulf %116, %118 : vector<32x32xf32>
    %c176 = arith.constant 176 : index
    %c0_39 = arith.constant 0 : index
    %120 = vector.load %arg2[%c176, %c0_39] : memref<184x32xf32, #tpu.memory_space<vmem>>, vector<1x32xf32>
    %121 = vector.broadcast %120 : vector<1x32xf32> to vector<32x32xf32>
    %122 = arith.addf %119, %121 : vector<32x32xf32>
    %c72 = arith.constant 72 : index
    %c0_40 = arith.constant 0 : index
    %123 = vector.load %arg2[%c72, %c0_40] : memref<184x32xf32, #tpu.memory_space<vmem>>, vector<32x32xf32>
    %cst_41 = arith.constant dense<0.000000e+00> : vector<32x32xf32>
    %124 = tpu.matmul %48, %123, %cst_41 {dimension_numbers = #tpu.dot_dimension_numbers<[1], [0], [0], [1], [0, 0, 1, 1], [], []>} : vector<32x32xf32>, vector<32x32xf32>, vector<32x32xf32> -> vector<32x32xf32>
    %c104 = arith.constant 104 : index
    %c0_42 = arith.constant 0 : index
    %125 = vector.load %arg2[%c104, %c0_42] : memref<184x32xf32, #tpu.memory_space<vmem>>, vector<32x32xf32>
    %cst_43 = arith.constant dense<0.000000e+00> : vector<32x32xf32>
    %126 = tpu.matmul %85, %125, %cst_43 {dimension_numbers = #tpu.dot_dimension_numbers<[1], [0], [0], [1], [0, 0, 1, 1], [], []>} : vector<32x32xf32>, vector<32x32xf32>, vector<32x32xf32> -> vector<32x32xf32>
    %127 = arith.addf %124, %126 : vector<32x32xf32>
    %c136 = arith.constant 136 : index
    %c0_44 = arith.constant 0 : index
    %128 = vector.load %arg2[%c136, %c0_44] : memref<184x32xf32, #tpu.memory_space<vmem>>, vector<32x32xf32>
    %cst_45 = arith.constant dense<0.000000e+00> : vector<32x32xf32>
    %129 = tpu.matmul %122, %128, %cst_45 {dimension_numbers = #tpu.dot_dimension_numbers<[1], [0], [0], [1], [0, 0, 1, 1], [], []>} : vector<32x32xf32>, vector<32x32xf32>, vector<32x32xf32> -> vector<32x32xf32>
    %130 = arith.addf %127, %129 : vector<32x32xf32>
    %c177 = arith.constant 177 : index
    %c0_46 = arith.constant 0 : index
    %131 = vector.load %arg2[%c177, %c0_46] : memref<184x32xf32, #tpu.memory_space<vmem>>, vector<1x32xf32>
    %132 = vector.broadcast %131 : vector<1x32xf32> to vector<32x32xf32>
    %133 = arith.addf %130, %132 : vector<32x32xf32>
    %cst_47 = arith.constant 0.000000e+00 : f32
    %134 = vector.broadcast %cst_47 : f32 to vector<32x32xf32>
    %135 = arith.maximumf %133, %134 : vector<32x32xf32>
    %c0_48 = arith.constant 0 : index
    %c0_49 = arith.constant 0 : index
    %136 = vector.load %arg3[%c0_48, %c0_49] : memref<32x32xf32, #tpu.memory_space<vmem>>, vector<32x32xf32>
    tpu.vector_store %arg3[%c0_48, %c0_49], %135 {strides = array<i32>} : memref<32x32xf32, #tpu.memory_space<vmem>>, vector<32x32xf32>,
    return
  }
}

</mosaic_0001>

<bundles_post_ra>
// kernel: gnn_forward.1
= control target key start
LH: loop header
LB: loop body
LE: loop exit
PB: predicated region body
PF: predicated region fallthrough
CT: control target
= control target key end

     0   :  { %vm28_vm0 = vcmask 130048   ;;  %s2011_s0 = inlined_call_operand.vmem [shape: f32[32,4], index: 0, kind: input, shape index: {}]   ;;  %s2012_s1 = inlined_call_operand.vmem [shape: f32[32,16], index: 1, kind: input, shape index: {}]   ;;  %s2013_s2 = inlined_call_operand.vmem [shape: f32[184,32], index: 2, kind: input, shape index: {}]   ;;  %s2014_s3 = inlined_call_operand.hbm [shape: f32[32,32], index: 3, kind: output, shape index: {}]  }
   0x1   :  { %v26_v0 = vld [vmem:[%s2012_s1 + $0x10] sm:$0xff]  ;;  %v24_v1 = vld [vmem:[%s2012_s1] sm:$0xff]  ;;  %v27_v2 = vld [vmem:[%s2012_s1 + $0x18] sm:$0xff] }
   0x2   :  { %v35_v3 = vsel %vm28_vm0, %v26_v0, 0.0  ;;  %v29_v4 = vsel %vm28_vm0, %v24_v1, 0.0  ;;  %v25_v5 = vld [vmem:[%s2012_s1 + $0x8] sm:$0xff] }
   0x3   :  { %8 = vsyncpa [#allocation3], 0  ;;  %36 = vadd.xlane.f32.xlu1 %v35_v3  ;;  %30 = vadd.xlane.f32.xlu0 %v29_v4  ;;  %v38_v6 = vsel %vm28_vm0, %v27_v2, 0.0  ;;  %v32_v7 = vsel %vm28_vm0, %v25_v5, 0.0  ;;  %v16_v8 = vld [vmem:[%s2011_s0 + $0x8] sm:$0xff]  ;;  %vm19_vm1 = vcmask 31744  }
   0x4   :  { %1548 = vmatprep.subr.msk.mxu0 %vm19_vm1, %v16_v8  ;;  %v18_v9 = vld [vmem:[%s2011_s0 + $0x18] sm:$0xff]  ;;  %v15_v10 = vld [vmem:[%s2011_s0] sm:$0xff]  ;;  %v17_v11 = vld [vmem:[%s2011_s0 + $0x10] sm:$0xff]  ;;  %vm225_vm2 = vcmask 64512   ;;  %s1709_s30 = smov 32   ;;  %vm347_vm3 = vcmask 261120  }
   0x5   :  { %1549 = vmatpush3.msk.msra.mxu0 %vm19_vm1, %v16_v8  ;;  %1555 = vmatprep.subr.msk.mxu1 %vm19_vm1, %v18_v9  ;;  %v219_v28 = vld [vmem:[%s2013_s2] sm:$0xff]  ;;  %v1437_v33 = vld [vmem:[%s2013_s2 + $0xa8] ss:$0 sm:$0xff]  ;;  %vm352_vm4 = vcmask 523264   ;;  %s1710_s4 = smov 96   ;;  %s1711_s7 = smov [#allocation2]  }
   0x6   :  { %1556 = vmatpush3.msk.msra.mxu1 %vm19_vm1, %v18_v9  ;;  %1550 = vmatprep.subr.msk.mxu0 %vm19_vm1, %v15_v10 }
   0x7   :  { %39 = vadd.xlane.f32.xlu1 %v38_v6  ;;  %33 = vadd.xlane.f32.xlu0 %v32_v7 }
   0x8   :  { %1557 = vmatprep.subr.msk.mxu1 %vm19_vm1, %v17_v11  ;;  %1551 = vmatpush3.msk.msra.mxu0 %vm19_vm1, %v15_v10 }
   0x9   :  { %1558 = vmatpush3.msk.msra.mxu1 %vm19_vm1, %v17_v11  ;;  %1562 = vmatprep.subr.mxu0 %v219_v28 }
  0x8c   :  { %v37_v12 = vpop.xlane.xlu1 %36  ;;  %v31_v13 = vpop.xlane.xlu0 %30 }
  0x8d   :  { %v43_v14 = vmax.f32 %v37_v12, 1.0  ;;  %v41_v15 = vmax.f32 %v31_v13, 1.0  ;;  %v379_v12 = vlaneseq }
  0x8f   :  { %1673 = vrcp.f32 %v43_v14  ;;  %v380_v13 = vshrl.u32 %v379_v12, 7 }
  0x90   :  { %1675 = vrcp.f32 %v41_v15  ;;  %v40_v16 = vpop.xlane.xlu1 %39  ;;  %v34_v17 = vpop.xlane.xlu0 %33 }
  0x91   :  { %v44_v18 = vmax.f32 %v40_v16, 1.0  ;;  %v42_v19 = vmax.f32 %v34_v17, 1.0  ;;  %v1809_v14 = vsub.s32 0, %v380_v13  ;;  %v562_v17 = vld [vmem:[%s2013_s2 + $0x20] sm:$0xff] }
  0x93   :  { %1677 = vrcp.f32 %v44_v18  ;;  %v561_v18 = vld [vmem:[%s2013_s2 + $0x18] sm:$0xff] }
  0x94   :  { %1679 = vrcp.f32 %v42_v19 }
  0x9c   :  { %v1674_v20 = vpop.eup %1673 }
  0x9d   :  { %v1676_v21 = vpop.eup %1675  ;;  %v1762_v22 = vmul.f32 %v1674_v20, %v26_v0 }
  0x9e   :  { %v1764_v23 = vmul.f32 %v1676_v21, %v24_v1 }
  0x9f   :  { %1559 = vmatprep.mubr.msk.f32.mxu1 %vm28_vm0, %v1762_v22 }
  0xa0   :  { %v1678_v24 = vpop.eup %1677  ;;  %1552 = vmatprep.mubr.msk.f32.mxu0 %vm28_vm0, %v1764_v23 }
  0xa1   :  { %v1680_v25 = vpop.eup %1679  ;;  %v1770_v26 = vmul.f32 %v1678_v24, %v27_v2 }
  0xa2   :  { %v1772_v27 = vmul.f32 %v1680_v25, %v25_v5  ;;  %v1442_v25 = vld [vmem:[%s2013_s2 + $0xa9] ss:$0 sm:$0xff] }
  0xa3   :  { %1560 = vmatmul.mubr.msk.f32.vlgmr.msra.gmra.mxu1 %vm28_vm0, %v1770_v26 }
  0xa4   :  { %1553 = vmatmul.mubr.msk.f32.vlgmr.msra.gmra.mxu0 %vm28_vm0, %v1772_v27  ;;  %1574 = vmatprep.mubr.msk.f32.mxu1 %vm28_vm0, %v1764_v23 }
  0xa5   :  { %1563 = vmatpush3.msra.mxu0 %v219_v28 }
  0xa6   :  { %1584 = vmatprep.subr.mxu0 %v562_v17 }
 0x163   :  { %v1561_v29 = vpop.f32.mrf.mxu1 }
 0x164   :  { %v1554_v30 = vpop.f32.mrf.mxu0 }
 0x165   :  { %v210_v32 = vpop.f32.mrf.mxu1 }
 0x166   :  { %v129_v31 = vpop.f32.mrf.mxu0 }
 0x167   :  { %1564 = vmatprep.mubr.msk.f32.mxu0 %vm225_vm2, %v129_v31 }
 0x168   :  { %1565 = vmatmul.mubr.msk.f32.vlgmr.msra.gmra.mxu0 %vm225_vm2, %v1554_v30 }
 0x169   :  { %1567 = vmatprep.mubr.msk.f32.mxu0 %vm225_vm2, %v210_v32  ;;  %1585 = vmatpush3.msra.mxu0 %v562_v17  ;;  %v1443_v32 = vld [vmem:[%s2013_s2 + $0xaa] ss:$0 sm:$0xff] }
 0x16a   :  { %1586 = vmatprep.subr.mxu0 %v561_v18 }
 0x16b   :  { %1587 = vmatpush3.msra.mxu0 %v561_v18 }
 0x16c   :  { %1568 = vmatmul.mubr.msk.f32.gmra.mxu0 %vm225_vm2, %v1561_v29 }
 0x228   :  { %v1566_v34 = vpop.f32.mrf.mxu0 }
 0x229   :  { %v310_v35 = vadd.f32 %v1566_v34, %v1437_v33 }
 0x22a   :  { %v304_v36 = vpop.f32.mrf.mxu0 }
 0x22b   :  { %v1786_v37 = vmax.f32 %v310_v35, 0.0  ;;  %v305_v38 = vadd.f32 %v1437_v33, %v304_v36 }
 0x22c   :  { %v1569_v39 = vpop.f32.mrf.mxu0 }
 0x22d   :  { %v1788_v40 = vmax.f32 %v305_v38, 0.0  ;;  %v328_v41 = vmul.f32 %v1786_v37, %v1786_v37  ;;  %v320_v43 = vadd.f32 %v1569_v39, %v1437_v33 }
 0x22e   :  { %v314_v42 = vpop.f32.mrf.mxu0 }
 0x22f   :  { %v315_v44 = vadd.f32 %v1437_v33, %v314_v42  ;;  %337 = vrot.lane.b32.xlu1 %v328_v41, %s1709_s30  ;;  %v327_v45 = vmul.f32 %v1788_v40, %v1788_v40  ;;  %v326_v47 = vmax.f32 %v320_v43, 0.0  ;;  %v560_v42 = vld [vmem:[%s2013_s2 + $0x10] sm:$0xff]  ;;  %v559_v43 = vld [vmem:[%s2013_s2 + $0x8] sm:$0xff] }
 0x230   :  { %1588 = vmatprep.subr.mxu0 %v560_v42 }
 0x231   :  { %v325_v46 = vmax.f32 %v315_v44, 0.0  ;;  %335 = vrot.lane.b32.xlu0 %v327_v45, %s1709_s30  ;;  %v330_v49 = vmul.f32 %v326_v47, %v326_v47  ;;  %1589 = vmatpush3.msra.mxu0 %v560_v42 }
 0x232   :  { %1590 = vmatprep.subr.mxu0 %v559_v43 }
 0x233   :  { %v329_v48 = vmul.f32 %v325_v46, %v325_v46  ;;  %1591 = vmatpush3.msra.mxu0 %v559_v43  ;;  %v1453_v43 = vld [vmem:[%s2013_s2 + $0xac] ss:$0 sm:$0xff] }
 0x235   :  { %339 = vrot.lane.b32.xlu1 %v329_v48, %s1709_s30 }
 0x239   :  { %341 = vrot.lane.b32.xlu1 %v330_v49, %s1709_s30 }
 0x2a1   :  { %v338_v50 = vpop.permute.xlu1 %337 }
 0x2a2   :  { %v349_v53 = vsel %vm347_vm3, %v1786_v37, %v338_v50 }
 0x2a3   :  { %v336_v51 = vpop.permute.xlu0 %335  ;;  %v354_v57 = vsel %vm352_vm4, %v349_v53, 0.0 }
 0x2a4   :  { %v348_v52 = vsel %vm347_vm3, %v1788_v40, %v336_v51 }
 0x2a5   :  { %v353_v54 = vsel %vm352_vm4, %v348_v52, 0.0 }
 0x2a6   :  { %v355_v59 = vadd.f32 %v354_v57, %v353_v54 }
 0x2a7   :  { %v340_v55 = vpop.permute.xlu1 %339 }
 0x2a8   :  { %v350_v56 = vsel %vm347_vm3, %v325_v46, %v340_v55 }
 0x2a9   :  { %v356_v58 = vsel %vm352_vm4, %v350_v56, 0.0 }
 0x2aa   :  { %v357_v61 = vadd.f32 %v356_v58, %v355_v59 }
 0x2ab   :  { %v342_v60 = vpop.permute.xlu1 %341 }
 0x2ac   :  { %v351_v62 = vsel %vm347_vm3, %v326_v47, %v342_v60 }
 0x2ad   :  { %v358_v63 = vsel %vm352_vm4, %v351_v62, 0.0 }
 0x2ae   :  { %v359_v0 = vadd.f32 %v358_v63, %v357_v61 }
 0x2b0   :  { %v360_v1 = vrot.slane %v359_v0, 4 }
 0x2b2   :  { %v361_v2 = vadd.f32 %v360_v1, %v359_v0 }
 0x2b4   :  { %v362_v3 = vrot.slane %v361_v2, 2 }
 0x2b6   :  { %v363_v4 = vadd.f32 %v362_v3, %v361_v2 }
 0x2b8   :  { %v364_v5 = vrot.slane %v363_v4, 1 }
 0x2ba   :  { %v365_v6 = vadd.f32 %v364_v5, %v363_v4 }
 0x2bc   :  { %v366_v7 = vmul.f32 0.03125, %v365_v6 }
 0x2be   :  { %v367_v8 = vmul.f32 %v366_v7, %v366_v7  ;;  %v373_v19 = vsub.f32 %v1788_v40, %v366_v7  ;;  %v374_v20 = vsub.f32 %v1786_v37, %v366_v7  ;;  %v376_v21 = vsub.f32 %v326_v47, %v366_v7  ;;  %v1448_v47 = vld [vmem:[%s2013_s2 + $0xab] ss:$0 sm:$0xff] }
 0x2bf   :  { %v375_v28 = vsub.f32 %v325_v46, %v366_v7 }
 0x2c0   :  { %369 = vrot.lane.b32.xlu0 %v367_v8, %s1709_s30 }
 0x332   :  { %v370_v9 = vpop.permute.xlu0 %369 }
 0x333   :  { %v372_v10 = vsub.f32 %v366_v7, %v370_v9 }
 0x335   :  { %v377_v11 = vadd.f32 1e-05, %v372_v10 }
 0x337   :  { %1681 = vrsqrt.f32 %v377_v11 }
 0x344   :  { %v1682_v15 = vpop.eup %1681 }
 0x345   :  { %v382_v16 = vrot.slane %v1682_v15, %v1809_v14 }
 0x347   :  { %384 = vrot.lane.b32.xlu1 %v382_v16, %s1710_s4 }
 0x3b9   :  { %v385_v24 = vpop.permute.xlu1 %384 }
 0x3ba   :  { %v387_v29 = vmul.f32 %v385_v24, %v373_v19  ;;  %v388_v30 = vmul.f32 %v385_v24, %v374_v20  ;;  %v390_v31 = vmul.f32 %v385_v24, %v376_v21  ;;  %v389_v33 = vmul.f32 %v385_v24, %v375_v28 }
 0x3bc   :  { %v397_v34 = vmul.f32 %v1442_v25, %v388_v30  ;;  %v396_v35 = vmul.f32 %v1442_v25, %v387_v29  ;;  %v399_v37 = vmul.f32 %v1442_v25, %v390_v31  ;;  %v398_v39 = vmul.f32 %v1442_v25, %v389_v33  ;;  %v902_v33 = vld [vmem:[%s2013_s2 + $0x40] sm:$0xff] }
 0x3bd   :  { %1612 = vmatprep.subr.mxu0 %v902_v33 }
 0x3be   :  { %v1827_v36 = vadd.f32 %v1443_v32, %v397_v34  ;;  %v1830_v38 = vadd.f32 %v1443_v32, %v396_v35  ;;  %v1834_v40 = vadd.f32 %v1443_v32, %v399_v37  ;;  %v1840_v41 = vadd.f32 %v1443_v32, %v398_v39  ;;  %v901_v34 = vld [vmem:[%s2013_s2 + $0x38] sm:$0xff] }
 0x3c0   :  { %1570 = vmatprep.subr.mxu1 %v1827_v36 }
 0x3c1   :  { %1571 = vmatpush3.msra.mxu1 %v1827_v36 }
 0x3c2   :  { %1572 = vmatprep.subr.mxu1 %v1830_v38 }
 0x3c3   :  { %1573 = vmatpush3.msra.mxu1 %v1830_v38 }
 0x3c4   :  { %1575 = vmatmul.mubr.msk.f32.vlgmr.msra.gmra.mxu1 %vm28_vm0, %v1772_v27  ;;  %1577 = vmatprep.subr.mxu1 %v1834_v40 }
 0x3c5   :  { %1578 = vmatpush3.msra.mxu1 %v1834_v40  ;;  %1581 = vmatprep.mubr.msk.f32.mxu1 %vm28_vm0, %v1762_v22 }
 0x3c6   :  { %1579 = vmatprep.subr.mxu1 %v1840_v41 }
 0x3c7   :  { %1580 = vmatpush3.msra.mxu1 %v1840_v41 }
 0x3c8   :  { %1582 = vmatmul.mubr.msk.f32.vlgmr.msra.gmra.mxu1 %vm28_vm0, %v1770_v26 }
 0x3c9   :  { %1602 = vmatprep.mubr.msk.f32.mxu1 %vm28_vm0, %v1764_v23 }
 0x484   :  { %v1576_v44 = vpop.f32.mrf.mxu1 }
 0x486   :  { %v475_v45 = vpop.f32.mrf.mxu1 }
 0x487   :  { %1592 = vmatprep.mubr.msk.f32.mxu0 %vm347_vm3, %v475_v45 }
 0x488   :  { %v1583_v46 = vpop.f32.mrf.mxu1  ;;  %1593 = vmatmul.mubr.msk.f32.vlgmr.msra.gmra.mxu0 %vm347_vm3, %v1576_v44 }
 0x489   :  { %1613 = vmatpush3.msra.mxu0 %v902_v33 }
 0x48a   :  { %v550_v23 = vpop.f32.mrf.mxu1  ;;  %1614 = vmatprep.subr.mxu0 %v901_v34 }
 0x48b   :  { %1595 = vmatprep.mubr.msk.f32.mxu0 %vm347_vm3, %v550_v23  ;;  %1615 = vmatpush3.msra.mxu0 %v901_v34 }
 0x48c   :  { %1596 = vmatmul.mubr.msk.f32.gmra.mxu0 %vm347_vm3, %v1583_v46 }
 0x548   :  { %v1594_v48 = vpop.f32.mrf.mxu0 }
 0x549   :  { %v652_v49 = vadd.f32 %v1594_v48, %v1448_v47 }
 0x54a   :  { %v646_v50 = vpop.f32.mrf.mxu0 }
 0x54b   :  { %v666_v51 = vmax.f32 %v652_v49, 0.0  ;;  %v647_v52 = vadd.f32 %v1448_v47, %v646_v50 }
 0x54c   :  { %v1597_v53 = vpop.f32.mrf.mxu0 }
 0x54d   :  { %v665_v54 = vmax.f32 %v647_v52, 0.0  ;;  %v662_v55 = vadd.f32 %v1597_v53, %v1448_v47  ;;  %v670_v56 = vmul.f32 %v666_v51, %v666_v51 }
 0x54e   :  { %v656_v57 = vpop.f32.mrf.mxu0 }
 0x54f   :  { %v668_v58 = vmax.f32 %v662_v55, 0.0  ;;  %v657_v59 = vadd.f32 %v1448_v47, %v656_v57  ;;  %679 = vrot.lane.b32.xlu1 %v670_v56, %s1709_s30  ;;  %v669_v60 = vmul.f32 %v665_v54, %v665_v54  ;;  %v1454_v47 = vld [vmem:[%s2013_s2 + $0xad] ss:$0 sm:$0xff]  ;;  %v1096_v57 = vld [vmem:[%s2013_s2 + $0x80] sm:$0xff] }
 0x551   :  { %v667_v61 = vmax.f32 %v657_v59, 0.0  ;;  %677 = vrot.lane.b32.xlu0 %v669_v60, %s1709_s30  ;;  %v672_v62 = vmul.f32 %v668_v58, %v668_v58  ;;  %v899_v59 = vld [vmem:[%s2013_s2 + $0x28] sm:$0xff]  ;;  %v1092_v60 = vld [vmem:[%s2013_s2 + $0x60] sm:$0xff] }
 0x553   :  { %683 = vrot.lane.b32.xlu1 %v672_v62, %s1709_s30  ;;  %v671_v63 = vmul.f32 %v667_v61, %v667_v61 }
 0x555   :  { %681 = vrot.lane.b32.xlu0 %v671_v63, %s1709_s30  ;;  %v1091_v63 = vld [vmem:[%s2013_s2 + $0x58] sm:$0xff] }
 0x5c1   :  { %v680_v0 = vpop.permute.xlu1 %679 }
 0x5c2   :  { %v690_v2 = vsel %vm347_vm3, %v666_v51, %v680_v0 }
 0x5c3   :  { %v678_v1 = vpop.permute.xlu0 %677  ;;  %v694_v6 = vsel %vm352_vm4, %v690_v2, 0.0 }
 0x5c4   :  { %v689_v3 = vsel %vm347_vm3, %v665_v54, %v678_v1  ;;  %v1090_v1 = vld [vmem:[%s2013_s2 + $0x50] sm:$0xff] }
 0x5c5   :  { %v693_v4 = vsel %vm352_vm4, %v689_v3, 0.0  ;;  %v684_v5 = vpop.permute.xlu1 %683  ;;  %v1089_v3 = vld [vmem:[%s2013_s2 + $0x48] sm:$0xff] }
 0x5c6   :  { %v695_v8 = vadd.f32 %v694_v6, %v693_v4  ;;  %v692_v9 = vsel %vm347_vm3, %v668_v58, %v684_v5  ;;  %v1459_v4 = vld [vmem:[%s2013_s2 + $0xae] ss:$0 sm:$0xff] }
 0x5c7   :  { %v682_v7 = vpop.permute.xlu0 %681  ;;  %v698_v13 = vsel %vm352_vm4, %v692_v9, 0.0 }
 0x5c8   :  { %v691_v10 = vsel %vm347_vm3, %v667_v61, %v682_v7 }
 0x5c9   :  { %v696_v11 = vsel %vm352_vm4, %v691_v10, 0.0 }
 0x5ca   :  { %v697_v12 = vadd.f32 %v696_v11, %v695_v8 }
 0x5cc   :  { %v699_v15 = vadd.f32 %v698_v13, %v697_v12 }
 0x5ce   :  { %v700_v16 = vrot.slane %v699_v15, 4 }
 0x5d0   :  { %v701_v17 = vadd.f32 %v700_v16, %v699_v15 }
 0x5d2   :  { %v702_v18 = vrot.slane %v701_v17, 2 }
 0x5d4   :  { %v703_v19 = vadd.f32 %v702_v18, %v701_v17 }
 0x5d6   :  { %v704_v20 = vrot.slane %v703_v19, 1 }
 0x5d8   :  { %v705_v21 = vadd.f32 %v704_v20, %v703_v19 }
 0x5da   :  { %v706_v24 = vmul.f32 0.03125, %v705_v21 }
 0x5dc   :  { %v707_v25 = vmul.f32 %v706_v24, %v706_v24  ;;  %v713_v35 = vsub.f32 %v665_v54, %v706_v24  ;;  %v714_v37 = vsub.f32 %v666_v51, %v706_v24  ;;  %v716_v39 = vsub.f32 %v668_v58, %v706_v24  ;;  %v1095_v58 = vld [vmem:[%s2013_s2 + $0x78] sm:$0xff] }
 0x5dd   :  { %v715_v44 = vsub.f32 %v667_v61, %v706_v24 }
 0x5de   :  { %709 = vrot.lane.b32.xlu0 %v707_v25, %s1709_s30 }
 0x650   :  { %v710_v28 = vpop.permute.xlu0 %709 }
 0x651   :  { %v712_v29 = vsub.f32 %v706_v24, %v710_v28 }
 0x653   :  { %v717_v30 = vadd.f32 1e-05, %v712_v29 }
 0x655   :  { %1683 = vrsqrt.f32 %v717_v30 }
 0x662   :  { %v1684_v31 = vpop.eup %1683 }
 0x663   :  { %v722_v32 = vrot.slane %v1684_v31, %v1809_v14 }
 0x665   :  { %724 = vrot.lane.b32.xlu1 %v722_v32, %s1710_s4 }
 0x6d7   :  { %v725_v42 = vpop.permute.xlu1 %724 }
 0x6d8   :  { %v727_v45 = vmul.f32 %v725_v42, %v713_v35  ;;  %v728_v46 = vmul.f32 %v725_v42, %v714_v37  ;;  %v730_v23 = vmul.f32 %v725_v42, %v716_v39  ;;  %v729_v48 = vmul.f32 %v725_v42, %v715_v44 }
 0x6da   :  { %v737_v49 = vmul.f32 %v1453_v43, %v728_v46  ;;  %v736_v50 = vmul.f32 %v1453_v43, %v727_v45  ;;  %v739_v53 = vmul.f32 %v1453_v43, %v730_v23  ;;  %v738_v54 = vmul.f32 %v1453_v43, %v729_v48  ;;  %v1294_v48 = vld [vmem:[%s2013_s2 + $0xa0] sm:$0xff] }
 0x6dc   :  { %v746_v52 = vadd.f32 %v1454_v47, %v737_v49  ;;  %v745_v51 = vadd.f32 %v1454_v47, %v736_v50  ;;  %v748_v55 = vadd.f32 %v1454_v47, %v739_v53  ;;  %v747_v56 = vadd.f32 %v1454_v47, %v738_v54  ;;  %v1293_v53 = vld [vmem:[%s2013_s2 + $0x98] sm:$0xff]  ;;  %v1291_v54 = vld [vmem:[%s2013_s2 + $0x88] sm:$0xff] }
 0x6de   :  { %1598 = vmatprep.subr.mxu1 %v746_v52 }
 0x6df   :  { %1599 = vmatpush3.msra.mxu1 %v746_v52 }
 0x6e0   :  { %1600 = vmatprep.subr.mxu1 %v745_v51 }
 0x6e1   :  { %1601 = vmatpush3.msra.mxu1 %v745_v51 }
 0x6e2   :  { %1603 = vmatmul.mubr.msk.f32.vlgmr.msra.gmra.mxu1 %vm28_vm0, %v1772_v27  ;;  %1605 = vmatprep.subr.mxu1 %v748_v55  ;;  %v1093_v27 = vld [vmem:[%s2013_s2 + $0x68] sm:$0xff] }
 0x6e3   :  { %1606 = vmatpush3.msra.mxu1 %v748_v55  ;;  %1609 = vmatprep.mubr.msk.f32.mxu1 %vm28_vm0, %v1762_v22  ;;  %v1094_v22 = vld [vmem:[%s2013_s2 + $0x70] sm:$0xff] }
 0x6e4   :  { %1607 = vmatprep.subr.mxu1 %v747_v56 }
 0x6e5   :  { %1608 = vmatpush3.msra.mxu1 %v747_v56 }
 0x6e6   :  { %1610 = vmatmul.mubr.msk.f32.vlgmr.msra.gmra.mxu1 %vm28_vm0, %v1770_v26  ;;  %1626 = vmatprep.subr.mxu1 %v1096_v57  ;;  %v900_v26 = vld [vmem:[%s2013_s2 + $0x30] sm:$0xff] }
 0x6e7   :  { %1627 = vmatpush3.msra.mxu1 %v1096_v57  ;;  %1634 = vmatprep.mubr.msk.f32.mxu1 %vm347_vm3, %v745_v51  ;;  %v1292_v51 = vld [vmem:[%s2013_s2 + $0x90] sm:$0xff] }
 0x6e8   :  { %1628 = vmatprep.subr.mxu1 %v1095_v58  ;;  %1616 = vmatprep.subr.mxu0 %v900_v26 }
 0x6e9   :  { %1629 = vmatpush3.msra.mxu1 %v1095_v58  ;;  %1617 = vmatpush3.msra.mxu0 %v900_v26  ;;  %v1464_v26 = vld [vmem:[%s2013_s2 + $0xaf] ss:$0 sm:$0xff] }
 0x6ea   :  { %1630 = vmatprep.subr.mxu1 %v1094_v22  ;;  %1618 = vmatprep.subr.mxu0 %v899_v59 }
 0x6eb   :  { %1631 = vmatpush3.msra.mxu1 %v1094_v22  ;;  %1619 = vmatpush3.msra.mxu0 %v899_v59 }
 0x6ec   :  { %1632 = vmatprep.subr.mxu1 %v1093_v27  ;;  %1640 = vmatprep.subr.mxu0 %v1092_v60 }
 0x6ed   :  { %1633 = vmatpush3.msra.mxu1 %v1093_v27 }
 0x6ee   :  { %1635 = vmatmul.mubr.msk.f32.vlgmr.msra.gmra.mxu1 %vm347_vm3, %v746_v52  ;;  %1654 = vmatprep.subr.mxu1 %v1294_v48 }
 0x6ef   :  { %1637 = vmatprep.mubr.msk.f32.mxu1 %vm347_vm3, %v747_v56  ;;  %1655 = vmatpush3.msra.mxu1 %v1294_v48 }
 0x6f0   :  { %1656 = vmatprep.subr.mxu1 %v1293_v53 }
 0x6f1   :  { %1657 = vmatpush3.msra.mxu1 %v1293_v53 }
 0x6f2   :  { %1638 = vmatmul.mubr.msk.f32.gmra.mxu1 %vm347_vm3, %v748_v55  ;;  %1658 = vmatprep.subr.mxu1 %v1292_v51 }
 0x6f3   :  { %1659 = vmatpush3.msra.mxu1 %v1292_v51 }
 0x6f4   :  { %1660 = vmatprep.subr.mxu1 %v1291_v54 }
 0x6f5   :  { %1661 = vmatpush3.msra.mxu1 %v1291_v54 }
 0x7a2   :  { %v1604_v61 = vpop.f32.mrf.mxu1 }
 0x7a4   :  { %v815_v62 = vpop.f32.mrf.mxu1 }
 0x7a5   :  { %1620 = vmatprep.mubr.msk.f32.mxu0 %vm347_vm3, %v815_v62 }
 0x7a6   :  { %v1611_v0 = vpop.f32.mrf.mxu1  ;;  %1621 = vmatmul.mubr.msk.f32.vlgmr.msra.gmra.mxu0 %vm347_vm3, %v1604_v61 }
 0x7a7   :  { %1641 = vmatpush3.msra.mxu0 %v1092_v60 }
 0x7a8   :  { %v890_v2 = vpop.f32.mrf.mxu1  ;;  %1642 = vmatprep.subr.mxu0 %v1091_v63 }
 0x7a9   :  { %1623 = vmatprep.mubr.msk.f32.mxu0 %vm347_vm3, %v890_v2  ;;  %1643 = vmatpush3.msra.mxu0 %v1091_v63 }
 0x7aa   :  { %1624 = vmatmul.mubr.msk.f32.gmra.mxu0 %vm347_vm3, %v1611_v0  ;;  %1644 = vmatprep.subr.mxu0 %v1090_v1 }
 0x7ab   :  { %1645 = vmatpush3.msra.mxu0 %v1090_v1  ;;  %1648 = vmatprep.mubr.msk.f32.mxu0 %vm347_vm3, %v1830_v38 }
 0x7ac   :  { %1646 = vmatprep.subr.mxu0 %v1089_v3 }
 0x7ad   :  { %1647 = vmatpush3.msra.mxu0 %v1089_v3 }
 0x7ae   :  { %1649 = vmatmul.mubr.msk.f32.vlgmr.msra.gmra.mxu0 %vm347_vm3, %v1827_v36 }
 0x7af   :  { %1651 = vmatprep.mubr.msk.f32.mxu0 %vm347_vm3, %v1840_v41 }
 0x7b2   :  { %1652 = vmatmul.mubr.msk.f32.gmra.mxu0 %vm347_vm3, %v1834_v40 }
 0x866   :  { %v1622_v5 = vpop.f32.mrf.mxu0 }
 0x867   :  { %v992_v6 = vadd.f32 %v1622_v5, %v1459_v4 }
 0x868   :  { %v986_v7 = vpop.f32.mrf.mxu0 }
 0x869   :  { %v1946_v8 = vmax.f32 %v992_v6, 0.0  ;;  %v987_v38 = vadd.f32 %v1459_v4, %v986_v7 }
 0x86a   :  { %v1625_v9 = vpop.f32.mrf.mxu0 }
 0x86b   :  { %v1948_v10 = vmax.f32 %v987_v38, 0.0  ;;  %v1002_v36 = vadd.f32 %v1625_v9, %v1459_v4  ;;  %v1010_v41 = vmul.f32 %v1946_v8, %v1946_v8 }
 0x86c   :  { %v996_v11 = vpop.f32.mrf.mxu0 }
 0x86d   :  { %v1952_v12 = vmax.f32 %v1002_v36, 0.0  ;;  %v997_v40 = vadd.f32 %v1459_v4, %v996_v11  ;;  %1019 = vrot.lane.b32.xlu1 %v1010_v41, %s1709_s30  ;;  %v1009_v13 = vmul.f32 %v1948_v10, %v1948_v10 }
 0x86e   :  { %v1650_v9 = vpop.f32.mrf.mxu0 }
 0x86f   :  { %v1007_v15 = vmax.f32 %v997_v40, 0.0  ;;  %1017 = vrot.lane.b32.xlu0 %v1009_v13, %s1709_s30  ;;  %v1012_v16 = vmul.f32 %v1952_v12, %v1952_v12  ;;  %v1478_v13 = vld [vmem:[%s2013_s2 + $0xb1] ss:$0 sm:$0xff] }
 0x870   :  { %v1272_v36 = vpop.f32.mrf.mxu0 }
 0x871   :  { %1023 = vrot.lane.b32.xlu1 %v1012_v16, %s1709_s30  ;;  %v1011_v17 = vmul.f32 %v1007_v15, %v1007_v15 }
 0x872   :  { %v1653_v11 = vpop.f32.mrf.mxu0 }
 0x873   :  { %1021 = vrot.lane.b32.xlu0 %v1011_v17, %s1709_s30 }
 0x874   :  { %v1282_v17 = vpop.f32.mrf.mxu0 }
 0x8df   :  { %v1020_v18 = vpop.permute.xlu1 %1019 }
 0x8e0   :  { %v1030_v20 = vsel %vm347_vm3, %v1946_v8, %v1020_v18 }
 0x8e1   :  { %v1018_v19 = vpop.permute.xlu0 %1017  ;;  %v1034_v28 = vsel %vm352_vm4, %v1030_v20, 0.0 }
 0x8e2   :  { %v1029_v21 = vsel %vm347_vm3, %v1948_v10, %v1018_v19 }
 0x8e3   :  { %v1033_v24 = vsel %vm352_vm4, %v1029_v21, 0.0  ;;  %v1024_v25 = vpop.permute.xlu1 %1023 }
 0x8e4   :  { %v1035_v30 = vadd.f32 %v1034_v28, %v1033_v24  ;;  %v1032_v31 = vsel %vm347_vm3, %v1952_v12, %v1024_v25 }
 0x8e5   :  { %v1022_v29 = vpop.permute.xlu0 %1021  ;;  %v1038_v35 = vsel %vm352_vm4, %v1032_v31, 0.0 }
 0x8e6   :  { %v1031_v32 = vsel %vm347_vm3, %v1007_v15, %v1022_v29 }
 0x8e7   :  { %v1036_v33 = vsel %vm352_vm4, %v1031_v32, 0.0 }
 0x8e8   :  { %v1037_v34 = vadd.f32 %v1036_v33, %v1035_v30 }
 0x8ea   :  { %v1039_v37 = vadd.f32 %v1038_v35, %v1037_v34 }
 0x8ec   :  { %v1040_v39 = vrot.slane %v1039_v37, 4 }
 0x8ee   :  { %v1041_v42 = vadd.f32 %v1040_v39, %v1039_v37 }
 0x8f0   :  { %v1042_v43 = vrot.slane %v1041_v42, 2 }
 0x8f2   :  { %v1043_v44 = vadd.f32 %v1042_v43, %v1041_v42 }
 0x8f4   :  { %v1044_v45 = vrot.slane %v1043_v44, 1 }
 0x8f6   :  { %v1045_v46 = vadd.f32 %v1044_v45, %v1043_v44 }
 0x8f8   :  { %v1046_v23 = vmul.f32 0.03125, %v1045_v46 }
 0x8fa   :  { %v1047_v47 = vmul.f32 %v1046_v23, %v1046_v23  ;;  %v1053_v57 = vsub.f32 %v1948_v10, %v1046_v23  ;;  %v1054_v58 = vsub.f32 %v1946_v8, %v1046_v23  ;;  %v1055_v22 = vsub.f32 %v1007_v15, %v1046_v23  ;;  %v1636_v8 = vpop.f32.mrf.mxu1 }
 0x8fb   :  { %v1056_v27 = vsub.f32 %v1952_v12, %v1046_v23  ;;  %v1278_v12 = vadd.f32 %v1650_v9, %v1636_v8 }
 0x8fc   :  { %1049 = vrot.lane.b32.xlu0 %v1047_v47, %s1709_s30  ;;  %v1175_v38 = vpop.f32.mrf.mxu1 }
 0x8fd   :  { %v1273_v15 = vadd.f32 %v1272_v36, %v1175_v38 }
 0x8fe   :  { %v1639_v10 = vpop.f32.mrf.mxu1 }
 0x8ff   :  { %v1288_v19 = vadd.f32 %v1653_v11, %v1639_v10 }
 0x900   :  { %v1185_v41 = vpop.f32.mrf.mxu1 }
 0x901   :  { %v1283_v25 = vadd.f32 %v1282_v17, %v1185_v41 }
 0x96e   :  { %v1050_v49 = vpop.permute.xlu0 %1049 }
 0x96f   :  { %v1052_v50 = vsub.f32 %v1046_v23, %v1050_v49 }
 0x971   :  { %v1057_v52 = vadd.f32 1e-05, %v1052_v50 }
 0x973   :  { %1685 = vrsqrt.f32 %v1057_v52 }
 0x980   :  { %v1686_v55 = vpop.eup %1685 }
 0x981   :  { %v1062_v56 = vrot.slane %v1686_v55, %v1809_v14  ;;  %v1465_v14 = vld [vmem:[%s2013_s2 + $0xb0] ss:$0 sm:$0xff]  ;;  %s1418_s2 = sshll.u32 %s1711_s7, 4  ;;  %s1419_s2 = int_to_ptr.vmem [resolvable:$true] %s1418_s2 }
 0x982   :  { %s1687_s8 = scalar_lea.vmem %s1419_s2, 512  ;;  %p1692_p1 = scmp.lt.s32.totalorder %s1419_s2, %s1419_s2 }
 0x983   :  { %1064 = vrot.lane.b32.xlu1 %v1062_v56, %s1710_s4  ;;  %p1688_p0 = scmp.ne.s32.totalorder %s1419_s2, %s1687_s8  ;;  %p1693_p2 = scmp.lt.s32.totalorder %s1687_s8, %s1687_s8 }
 0x985   :  { %p1694_p3 = por %p1693_p2, %p1692_p1 }
 0x987   :  { %p1695_p4 = pnand %p1694_p3, %p1688_p0 }
 0x9f5   :  { %v1065_v59 = vpop.permute.xlu1 %1064 }
 0x9f6   :  { %v1067_v60 = vmul.f32 %v1065_v59, %v1053_v57  ;;  %v1068_v61 = vmul.f32 %v1065_v59, %v1054_v58  ;;  %v1069_v62 = vmul.f32 %v1065_v59, %v1055_v22  ;;  %v1070_v63 = vmul.f32 %v1065_v59, %v1056_v27 }
 0x9f8   :  { %v1076_v0 = vmul.f32 %v1464_v26, %v1067_v60  ;;  %v1077_v1 = vmul.f32 %v1464_v26, %v1068_v61  ;;  %v1078_v2 = vmul.f32 %v1464_v26, %v1069_v62  ;;  %v1079_v5 = vmul.f32 %v1464_v26, %v1070_v63 }
 0x9fa   :  { %v1086_v3 = vadd.f32 %v1465_v14, %v1077_v1  ;;  %v1085_v4 = vadd.f32 %v1465_v14, %v1076_v0  ;;  %v1087_v6 = vadd.f32 %v1465_v14, %v1078_v2  ;;  %v1088_v7 = vadd.f32 %v1465_v14, %v1079_v5 }
 0x9fc   :  { %1662 = vmatprep.mubr.msk.f32.mxu1 %vm347_vm3, %v1085_v4 }
 0x9fd   :  { %1663 = vmatmul.mubr.msk.f32.vlgmr.msra.gmra.mxu1 %vm347_vm3, %v1086_v3 }
 0x9fe   :  { %1665 = vmatprep.mubr.msk.f32.mxu1 %vm347_vm3, %v1087_v6 }
 0xa01   :  { %1666 = vmatmul.mubr.msk.f32.gmra.mxu1 %vm347_vm3, %v1088_v7 }
 0xabd   :  { %v1664_v40 = vpop.f32.mrf.mxu1 }
 0xabe   :  { %v1393_v16 = vadd.f32 %v1664_v40, %v1278_v12 }
 0xabf   :  { %v1373_v18 = vpop.f32.mrf.mxu1 }
 0xac0   :  { %v1402_v20 = vadd.f32 %v1478_v13, %v1393_v16  ;;  %v1392_v21 = vadd.f32 %v1373_v18, %v1273_v15 }
 0xac1   :  { %v1667_v24 = vpop.f32.mrf.mxu1 }
 0xac2   :  { %v1406_v28 = vmax.f32 %v1402_v20, 0.0  ;;  %v1401_v29 = vadd.f32 %v1478_v13, %v1392_v21  ;;  %v1395_v30 = vadd.f32 %v1667_v24, %v1288_v19 }
 0xac3   :  { %v1383_v31 = vpop.f32.mrf.mxu1 }
 0xac4   :  { %1410 = vst.msk [vmem:[#allocation2 + $0x8] sm:$0xff] %vm347_vm3, %v1406_v28  ;;  %v1405_v32 = vmax.f32 %v1401_v29, 0.0  ;;  %v1404_v33 = vadd.f32 %v1478_v13, %v1395_v30  ;;  %v1394_v34 = vadd.f32 %v1383_v31, %v1283_v25 }
 0xac6   :  { %1409 = vst.msk [vmem:[#allocation2] sm:$0xff] %vm347_vm3, %v1405_v32  ;;  %v1408_v35 = vmax.f32 %v1404_v33, 0.0  ;;  %v1403_v37 = vadd.f32 %v1478_v13, %v1394_v34 }
 0xac8   :  { %1412 = vst.msk [vmem:[#allocation2 + $0x18] sm:$0xff] %vm347_vm3, %v1408_v35  ;;  %v1407_v39 = vmax.f32 %v1403_v37, 0.0 }
 0xaca   :  { %1411 = vst.msk [vmem:[#allocation2 + $0x10] sm:$0xff] %vm347_vm3, %v1407_v39 }
 0xacb   :  { %1698 = shalt.err (!%p1695_p4)
}
 0xacc   :  { %s1712_s9 = smov 128   ;;  %s1713_s10 = smov 8  }
 0xacd   :  { %1424 = dma.vmem_to_hbm [thread:$0]  %s1419_s2, 512, %s2014_s3, [#allocation3], %s1712_s9, %s1712_s9, %s1713_s10  }
 0xace   :  { %1707 = dma.done.wait [#allocation3], 512  }
 0xacf   :  { %1708 = vsyncadd [#allocation3], 4294966784 }
 0xad0   :  { %1428 = vsyncpa [#allocation3], 1 }

</bundles_post_ra>
